<compile_context>
chip_gen: v6e
topology: v6e:2x2x1
jax: 0.10.0
libtpu: 0.0.40
codegen_flags: <defaults>
</compile_context>

<pallas_src>
import math
import jax
import jax.numpy as jnp
from jax import lax
from jax.experimental import pallas as pl
from jax.experimental.pallas import tpu as pltpu


# ----------------------------------------------------------------------------
# Pallas kernel: per-mode complex channel mixing, modes on lanes.
#   x_ref: (Cin, 2, B,    tm)   [re, im] per input channel
#   w_ref: (Cin, 2, Cout, tm)   [re, im] per input channel
#   o_ref: (2,   B, Cout, tm)   [re, im] planes of the result
# ----------------------------------------------------------------------------
def _specmul_kernel(x_ref, w_ref, o_ref):
    cin = x_ref.shape[0]
    o_ref[...] = jnp.zeros_like(o_ref)

    def body(i, carry):
        xv = x_ref[i]                      # (2, B, tm)
        wv = w_ref[i]                      # (2, Cout, tm)
        xr = xv[0][:, None, :]             # (B, 1, tm)
        xi = xv[1][:, None, :]
        wr = wv[0][None, :, :]             # (1, Cout, tm)
        wi = wv[1][None, :, :]
        o_ref[0] = o_ref[0] + (xr * wr - xi * wi)
        o_ref[1] = o_ref[1] + (xr * wi + xi * wr)
        return carry

    # Unrolled for small Cin (scheduler visibility); partially unrolled scf.for
    # for larger Cin so vreg live ranges stay bounded.
    lax.fori_loop(0, cin, body, 0, unroll=True if cin <= 16 else 4)


def _round_up(v, m):
    return (v + m - 1) // m * m


def _choose_mode_tile(M, B, Cin, Cout, budget_bytes=24 * 1024 * 1024):
    """Pick a lane-dense mode tile (multiple of 128) from a VMEM budget that is
    safe on v5e/v6e/v7x, keeping >= 2 grid steps when there are enough modes."""
    bp, cop = _round_up(B, 8), _round_up(Cout, 8)
    # f32 bytes per retained mode per pipeline stage ((8,128) sublane padding).
    per_mode = 4 * 2 * (Cin * bp + Cin * cop + B * cop)
    tm = max(128, (budget_bytes // (2 * per_mode)) // 128 * 128)  # double-buffered
    tm = min(tm, 2048)
    mp128 = _round_up(M, 128)
    if mp128 >= 256:  # keep >= 2 balanced steps (pipelining + v7x 2nd TC)
        tm = min(tm, max(128, (mp128 // 2) // 128 * 128))
    return min(tm, mp128)


def spectral_mul_pallas(x_ft, weights):
    """Complex einsum 'bixy,ioxy->boxy' via Pallas; returns (real, imag) planes."""
    B, Cin, Ky, Kx = x_ft.shape
    Cout = weights.shape[1]
    M = Ky * Kx

    tm = _choose_mode_tile(M, B, Cin, Cout)
    Mp = _round_up(M, tm)

    # x: (Cin, 2, B, M)  — tiny tensor, cheap repack.
    xr = jnp.real(x_ft).astype(jnp.float32).reshape(B, Cin, M)
    xi = jnp.imag(x_ft).astype(jnp.float32).reshape(B, Cin, M)
    x_pk = jnp.stack([jnp.transpose(xr, (1, 0, 2)),
                      jnp.transpose(xi, (1, 0, 2))], axis=1)

    # W: (Cin, 2, Cout, M) — no transpose, no 2x2 duplication.
    wr = jnp.real(weights).astype(jnp.float32).reshape(Cin, Cout, M)
    wi = jnp.imag(weights).astype(jnp.float32).reshape(Cin, Cout, M)
    w_pk = jnp.stack([wr, wi], axis=1)

    if Mp != M:
        pad = ((0, 0), (0, 0), (0, 0), (0, Mp - M))
        x_pk = jnp.pad(x_pk, pad)
        w_pk = jnp.pad(w_pk, pad)

    out = pl.pallas_call(
        _specmul_kernel,
        out_shape=jax.ShapeDtypeStruct((2, B, Cout, Mp), jnp.float32),
        grid=(Mp // tm,),
        in_specs=[
            pl.BlockSpec((Cin, 2, B, tm), lambda m: (0, 0, 0, m)),
            pl.BlockSpec((Cin, 2, Cout, tm), lambda m: (0, 0, 0, m)),
        ],
        out_specs=pl.BlockSpec((2, B, Cout, tm), lambda m: (0, 0, 0, m)),
        compiler_params=pltpu.CompilerParams(
            dimension_semantics=("parallel",),       # megacore-shardable on v7x
            vmem_limit_bytes=48 * 1024 * 1024,       # safe on v5e/v6e/v7x
        ),
        cost_estimate=pl.CostEstimate(
            flops=8 * B * Cin * Cout * Mp,
            transcendentals=0,
            bytes_accessed=4 * Mp * (2 * B * Cin + 2 * Cin * Cout + 2 * B * Cout),
        ),
    )(x_pk, w_pk)

    out_re = out[0, :, :, :M].reshape(B, Cout, Ky, Kx)
    out_im = out[1, :, :, :M].reshape(B, Cout, Ky, Kx)
    return out_re, out_im


# ----------------------------------------------------------------------------
# Parameter construction (Spectral_weights.get_weight semantics)
# ----------------------------------------------------------------------------
def make_spectral_weights(key, in_channels, out_channels, modes1, modes2):
    """Deterministic stand-in for kaiming_uniform_ init; same shapes & assembly
    as Spectral_weights.get_weight()."""
    kY = 2 * modes1 - 1
    kX = modes2
    k_y0r, k_y0i, k_pxr, k_pxi, k_00 = jax.random.split(key, 5)

    def u(k, shape, fan):
        bound = math.sqrt(6.0 / ((1.0 + 5.0) * fan))  # kaiming_uniform a=sqrt(5)
        return jax.random.uniform(k, shape, jnp.float32, -bound, bound)

    fan_y0 = out_channels * (modes1 - 1) * 1
    fan_px = out_channels * kY * (kX - 1)
    fan_00 = out_channels * 1 * 1

    y0 = (u(k_y0r, (in_channels, out_channels, modes1 - 1, 1), fan_y0)
          + 1j * u(k_y0i, (in_channels, out_channels, modes1 - 1, 1), fan_y0)
          ).astype(jnp.complex64)
    yposx = (u(k_pxr, (in_channels, out_channels, kY, kX - 1), fan_px)
             + 1j * u(k_pxi, (in_channels, out_channels, kY, kX - 1), fan_px)
             ).astype(jnp.complex64)
    w00 = u(k_00, (in_channels, out_channels, 1, 1), fan_00)

    col0 = jnp.concatenate(
        [y0, w00.astype(jnp.complex64), jnp.conj(jnp.flip(y0, axis=-2))], axis=-2
    )                                                  # (Cin, Cout, kY, 1)
    weights = jnp.concatenate([col0, yposx], axis=-1)  # (Cin, Cout, kY, kX)
    return weights


# ----------------------------------------------------------------------------
# Forward pass (SpectralConv2d.forward semantics)
# ----------------------------------------------------------------------------
def spectral_conv2d_forward(x, weights, modes1, modes2, out_size):
    """x: (B, Cin, H, W) float32 -> (B, Cout, out_size, out_size) float32"""
    B = x.shape[0]
    in_size = x.shape[-1]
    H = x.shape[-2]
    Cout = weights.shape[1]

    # index of zero frequency after fftshift(fftfreq(n)) is n // 2 (even & odd n)
    freq0_y_in = H // 2

    x_ft = jnp.fft.fftshift(jnp.fft.rfft2(x, norm="ortho"), axes=-2)
    x_ft = x_ft[..., freq0_y_in - modes1 + 1: freq0_y_in + modes1, :modes2]

    # --- Pallas hot path: complex channel mixing per retained Fourier mode ---
    out_re, out_im = spectral_mul_pallas(x_ft.astype(jnp.complex64), weights)
    out_core = lax.complex(out_re, out_im)   # complex formed only where needed

    out_ft = jnp.zeros((B, Cout, out_size, out_size // 2 + 1), dtype=jnp.complex64)
    freq0_y_out = out_size // 2
    out_ft = out_ft.at[
        ..., freq0_y_out - modes1 + 1: freq0_y_out + modes1, :modes2
    ].set(out_core)

    x_out = jnp.fft.irfft2(
        jnp.fft.ifftshift(out_ft, axes=-2), s=(out_size, out_size), norm="ortho"
    ) * (out_size / in_size)
    return x_out.astype(jnp.float32)


# ----------------------------------------------------------------------------
if __name__ == "__main__":
    key = jax.random.PRNGKey(0)
    kx, kw, k2x, k2w = jax.random.split(key, 4)

    # --- small shapes consistent with the module ---
    B, Cin, Cout = 2, 4, 6
    H = W = 16
    modes1, modes2 = 4, 4
    out_size = 24

    x = jax.random.normal(kx, (B, Cin, H, W), dtype=jnp.float32)
    weights = make_spectral_weights(kw, Cin, Cout, modes1, modes2)

    y = spectral_conv2d_forward(x, weights, modes1, modes2, out_size)
    y = jax.block_until_ready(y)
    assert y.shape == (B, Cout, out_size, out_size)

    # cross-check the Pallas contraction against a pure-JAX complex einsum
    freq0 = H // 2
    x_ft = jnp.fft.fftshift(jnp.fft.rfft2(x, norm="ortho"), axes=-2)
    x_ft = x_ft[..., freq0 - modes1 + 1: freq0 + modes1, :modes2].astype(jnp.complex64)
    ref_core = jnp.einsum("bixy,ioxy->boxy", x_ft, weights)
    pr, pi = spectral_mul_pallas(x_ft, weights)
    pal_core = jax.block_until_ready(lax.complex(pr, pi))
    assert jnp.allclose(ref_core, pal_core, atol=1e-4, rtol=1e-4)

    # --- verify the same kernel at moderate channel counts (fori_loop branch) ---
    B2, Cin2, Cout2, m1b, m2b = 2, 32, 32, 8, 8
    Ky2, Kx2 = 2 * m1b - 1, m2b
    k2a, k2b = jax.random.split(k2x)
    x2 = (jax.random.normal(k2a, (B2, Cin2, Ky2, Kx2), jnp.float32)
          + 1j * jax.random.normal(k2b, (B2, Cin2, Ky2, Kx2), jnp.float32)
          ).astype(jnp.complex64)
    k2c, k2d = jax.random.split(k2w)
    w2 = (jax.random.normal(k2c, (Cin2, Cout2, Ky2, Kx2), jnp.float32)
          + 1j * jax.random.normal(k2d, (Cin2, Cout2, Ky2, Kx2), jnp.float32)
          ).astype(jnp.complex64)
    ref2 = jnp.einsum("bixy,ioxy->boxy", x2, w2)
    pr2, pi2 = spectral_mul_pallas(x2, w2)
    pal2 = jax.block_until_ready(lax.complex(pr2, pi2))
    assert jnp.allclose(ref2, pal2, atol=1e-3, rtol=1e-3)

    print("KERNEL_OK")
</pallas_src>

<mosaic_0001>
module attributes {stable_mosaic.version = 11 : i64} {
  func.func @_specmul_kernel(%arg0: i32, %arg1: memref<4x2x2x128xf32, #tpu.memory_space<vmem>>, %arg2: memref<4x2x6x128xf32, #tpu.memory_space<vmem>>, %arg3: memref<2x2x6x128xf32, #tpu.memory_space<vmem>>) attributes {dimension_semantics = [#tpu.dimension_semantics<parallel>], iteration_bounds = array<i64: 1>, scalar_prefetch = 0 : i64, scratch_operands = 0 : i64, tpu.core_type = #tpu.core_type<tc>, window_params = [{transform_indices = @transform_0, window_bounds = array<i64: 4, 2, 2, 128>}, {transform_indices = @transform_1, window_bounds = array<i64: 4, 2, 6, 128>}, {transform_indices = @transform_2, window_bounds = array<i64: 2, 2, 6, 128>}]} {
    %cst = arith.constant 0.000000e+00 : f32
    %0 = vector.broadcast %cst : f32 to vector<2x2x6x128xf32>
    %c0 = arith.constant 0 : index
    %c0_0 = arith.constant 0 : index
    %c0_1 = arith.constant 0 : index
    %c0_2 = arith.constant 0 : index
    %1 = vector.load %arg3[%c0, %c0_0, %c0_1, %c0_2] : memref<2x2x6x128xf32, #tpu.memory_space<vmem>>, vector<2x2x6x128xf32>
    tpu.vector_store %arg3[%c0, %c0_0, %c0_1, %c0_2], %0 {strides = array<i32>} : memref<2x2x6x128xf32, #tpu.memory_space<vmem>>, vector<2x2x6x128xf32>,
    %c0_i32 = arith.constant 0 : i32
    %2 = arith.index_cast %c0_i32 : i32 to index
    %c0_3 = arith.constant 0 : index
    %c0_4 = arith.constant 0 : index
    %c0_5 = arith.constant 0 : index
    %3 = vector.load %arg1[%2, %c0_3, %c0_4, %c0_5] : memref<4x2x2x128xf32, #tpu.memory_space<vmem>>, vector<1x2x2x128xf32>
    %4 = vector.shape_cast %3 : vector<1x2x2x128xf32> to vector<2x2x128xf32>
    %5 = arith.index_cast %c0_i32 : i32 to index
    %c0_6 = arith.constant 0 : index
    %c0_7 = arith.constant 0 : index
    %c0_8 = arith.constant 0 : index
    %6 = vector.load %arg2[%5, %c0_6, %c0_7, %c0_8] : memref<4x2x6x128xf32, #tpu.memory_space<vmem>>, vector<1x2x6x128xf32>
    %7 = vector.shape_cast %6 : vector<1x2x6x128xf32> to vector<2x6x128xf32>
    %8 = vector.extract_strided_slice %4 {offsets = [0, 0, 0], sizes = [1, 2, 128], strides = [1, 1, 1]} : vector<2x2x128xf32> to vector<1x2x128xf32>
    %9 = vector.shape_cast %8 : vector<1x2x128xf32> to vector<2x128xf32>
    %10 = vector.shape_cast %9 : vector<2x128xf32> to vector<2x1x128xf32>
    %11 = vector.extract_strided_slice %4 {offsets = [1, 0, 0], sizes = [1, 2, 128], strides = [1, 1, 1]} : vector<2x2x128xf32> to vector<1x2x128xf32>
    %12 = vector.shape_cast %11 : vector<1x2x128xf32> to vector<2x128xf32>
    %13 = vector.shape_cast %12 : vector<2x128xf32> to vector<2x1x128xf32>
    %14 = vector.extract_strided_slice %7 {offsets = [0, 0, 0], sizes = [1, 6, 128], strides = [1, 1, 1]} : vector<2x6x128xf32> to vector<1x6x128xf32>
    %15 = vector.shape_cast %14 : vector<1x6x128xf32> to vector<6x128xf32>
    %16 = vector.shape_cast %15 : vector<6x128xf32> to vector<1x6x128xf32>
    %17 = vector.extract_strided_slice %7 {offsets = [1, 0, 0], sizes = [1, 6, 128], strides = [1, 1, 1]} : vector<2x6x128xf32> to vector<1x6x128xf32>
    %18 = vector.shape_cast %17 : vector<1x6x128xf32> to vector<6x128xf32>
    %19 = vector.shape_cast %18 : vector<6x128xf32> to vector<1x6x128xf32>
    %c0_9 = arith.constant 0 : index
    %c0_10 = arith.constant 0 : index
    %c0_11 = arith.constant 0 : index
    %c0_12 = arith.constant 0 : index
    %20 = vector.load %arg3[%c0_9, %c0_10, %c0_11, %c0_12] : memref<2x2x6x128xf32, #tpu.memory_space<vmem>>, vector<1x2x6x128xf32>
    %21 = vector.shape_cast %20 : vector<1x2x6x128xf32> to vector<2x6x128xf32>
    %22 = vector.broadcast %10 : vector<2x1x128xf32> to vector<2x6x128xf32>
    %23 = vector.broadcast %16 : vector<1x6x128xf32> to vector<2x6x128xf32>
    %24 = arith.mulf %22, %23 : vector<2x6x128xf32>
    %25 = vector.broadcast %13 : vector<2x1x128xf32> to vector<2x6x128xf32>
    %26 = vector.broadcast %19 : vector<1x6x128xf32> to vector<2x6x128xf32>
    %27 = arith.mulf %25, %26 : vector<2x6x128xf32>
    %28 = arith.subf %24, %27 : vector<2x6x128xf32>
    %29 = arith.addf %21, %28 : vector<2x6x128xf32>
    %c0_13 = arith.constant 0 : index
    %c0_14 = arith.constant 0 : index
    %c0_15 = arith.constant 0 : index
    %c0_16 = arith.constant 0 : index
    %30 = vector.load %arg3[%c0_13, %c0_14, %c0_15, %c0_16] : memref<2x2x6x128xf32, #tpu.memory_space<vmem>>, vector<1x2x6x128xf32>
    %31 = vector.shape_cast %30 : vector<1x2x6x128xf32> to vector<2x6x128xf32>
    %32 = vector.shape_cast %29 : vector<2x6x128xf32> to vector<1x2x6x128xf32>
    tpu.vector_store %arg3[%c0_13, %c0_14, %c0_15, %c0_16], %32 {strides = array<i32>} : memref<2x2x6x128xf32, #tpu.memory_space<vmem>>, vector<1x2x6x128xf32>,
    %c1 = arith.constant 1 : index
    %c0_17 = arith.constant 0 : index
    %c0_18 = arith.constant 0 : index
    %c0_19 = arith.constant 0 : index
    %33 = vector.load %arg3[%c1, %c0_17, %c0_18, %c0_19] : memref<2x2x6x128xf32, #tpu.memory_space<vmem>>, vector<1x2x6x128xf32>
    %34 = vector.shape_cast %33 : vector<1x2x6x128xf32> to vector<2x6x128xf32>
    %35 = vector.broadcast %10 : vector<2x1x128xf32> to vector<2x6x128xf32>
    %36 = vector.broadcast %19 : vector<1x6x128xf32> to vector<2x6x128xf32>
    %37 = arith.mulf %35, %36 : vector<2x6x128xf32>
    %38 = vector.broadcast %13 : vector<2x1x128xf32> to vector<2x6x128xf32>
    %39 = vector.broadcast %16 : vector<1x6x128xf32> to vector<2x6x128xf32>
    %40 = arith.mulf %38, %39 : vector<2x6x128xf32>
    %41 = arith.addf %37, %40 : vector<2x6x128xf32>
    %42 = arith.addf %34, %41 : vector<2x6x128xf32>
    %c1_20 = arith.constant 1 : index
    %c0_21 = arith.constant 0 : index
    %c0_22 = arith.constant 0 : index
    %c0_23 = arith.constant 0 : index
    %43 = vector.load %arg3[%c1_20, %c0_21, %c0_22, %c0_23] : memref<2x2x6x128xf32, #tpu.memory_space<vmem>>, vector<1x2x6x128xf32>
    %44 = vector.shape_cast %43 : vector<1x2x6x128xf32> to vector<2x6x128xf32>
    %45 = vector.shape_cast %42 : vector<2x6x128xf32> to vector<1x2x6x128xf32>
    tpu.vector_store %arg3[%c1_20, %c0_21, %c0_22, %c0_23], %45 {strides = array<i32>} : memref<2x2x6x128xf32, #tpu.memory_space<vmem>>, vector<1x2x6x128xf32>,
    %c1_i32 = arith.constant 1 : i32
    %46 = arith.index_cast %c1_i32 : i32 to index
    %c0_24 = arith.constant 0 : index
    %c0_25 = arith.constant 0 : index
    %c0_26 = arith.constant 0 : index
    %47 = vector.load %arg1[%46, %c0_24, %c0_25, %c0_26] : memref<4x2x2x128xf32, #tpu.memory_space<vmem>>, vector<1x2x2x128xf32>
    %48 = vector.shape_cast %47 : vector<1x2x2x128xf32> to vector<2x2x128xf32>
    %49 = arith.index_cast %c1_i32 : i32 to index
    %c0_27 = arith.constant 0 : index
    %c0_28 = arith.constant 0 : index
    %c0_29 = arith.constant 0 : index
    %50 = vector.load %arg2[%49, %c0_27, %c0_28, %c0_29] : memref<4x2x6x128xf32, #tpu.memory_space<vmem>>, vector<1x2x6x128xf32>
    %51 = vector.shape_cast %50 : vector<1x2x6x128xf32> to vector<2x6x128xf32>
    %52 = vector.extract_strided_slice %48 {offsets = [0, 0, 0], sizes = [1, 2, 128], strides = [1, 1, 1]} : vector<2x2x128xf32> to vector<1x2x128xf32>
    %53 = vector.shape_cast %52 : vector<1x2x128xf32> to vector<2x128xf32>
    %54 = vector.shape_cast %53 : vector<2x128xf32> to vector<2x1x128xf32>
    %55 = vector.extract_strided_slice %48 {offsets = [1, 0, 0], sizes = [1, 2, 128], strides = [1, 1, 1]} : vector<2x2x128xf32> to vector<1x2x128xf32>
    %56 = vector.shape_cast %55 : vector<1x2x128xf32> to vector<2x128xf32>
    %57 = vector.shape_cast %56 : vector<2x128xf32> to vector<2x1x128xf32>
    %58 = vector.extract_strided_slice %51 {offsets = [0, 0, 0], sizes = [1, 6, 128], strides = [1, 1, 1]} : vector<2x6x128xf32> to vector<1x6x128xf32>
    %59 = vector.shape_cast %58 : vector<1x6x128xf32> to vector<6x128xf32>
    %60 = vector.shape_cast %59 : vector<6x128xf32> to vector<1x6x128xf32>
    %61 = vector.extract_strided_slice %51 {offsets = [1, 0, 0], sizes = [1, 6, 128], strides = [1, 1, 1]} : vector<2x6x128xf32> to vector<1x6x128xf32>
    %62 = vector.shape_cast %61 : vector<1x6x128xf32> to vector<6x128xf32>
    %63 = vector.shape_cast %62 : vector<6x128xf32> to vector<1x6x128xf32>
    %c0_30 = arith.constant 0 : index
    %c0_31 = arith.constant 0 : index
    %c0_32 = arith.constant 0 : index
    %c0_33 = arith.constant 0 : index
    %64 = vector.load %arg3[%c0_30, %c0_31, %c0_32, %c0_33] : memref<2x2x6x128xf32, #tpu.memory_space<vmem>>, vector<1x2x6x128xf32>
    %65 = vector.shape_cast %64 : vector<1x2x6x128xf32> to vector<2x6x128xf32>
    %66 = vector.broadcast %54 : vector<2x1x128xf32> to vector<2x6x128xf32>
    %67 = vector.broadcast %60 : vector<1x6x128xf32> to vector<2x6x128xf32>
    %68 = arith.mulf %66, %67 : vector<2x6x128xf32>
    %69 = vector.broadcast %57 : vector<2x1x128xf32> to vector<2x6x128xf32>
    %70 = vector.broadcast %63 : vector<1x6x128xf32> to vector<2x6x128xf32>
    %71 = arith.mulf %69, %70 : vector<2x6x128xf32>
    %72 = arith.subf %68, %71 : vector<2x6x128xf32>
    %73 = arith.addf %65, %72 : vector<2x6x128xf32>
    %c0_34 = arith.constant 0 : index
    %c0_35 = arith.constant 0 : index
    %c0_36 = arith.constant 0 : index
    %c0_37 = arith.constant 0 : index
    %74 = vector.load %arg3[%c0_34, %c0_35, %c0_36, %c0_37] : memref<2x2x6x128xf32, #tpu.memory_space<vmem>>, vector<1x2x6x128xf32>
    %75 = vector.shape_cast %74 : vector<1x2x6x128xf32> to vector<2x6x128xf32>
    %76 = vector.shape_cast %73 : vector<2x6x128xf32> to vector<1x2x6x128xf32>
    tpu.vector_store %arg3[%c0_34, %c0_35, %c0_36, %c0_37], %76 {strides = array<i32>} : memref<2x2x6x128xf32, #tpu.memory_space<vmem>>, vector<1x2x6x128xf32>,
    %c1_38 = arith.constant 1 : index
    %c0_39 = arith.constant 0 : index
    %c0_40 = arith.constant 0 : index
    %c0_41 = arith.constant 0 : index
    %77 = vector.load %arg3[%c1_38, %c0_39, %c0_40, %c0_41] : memref<2x2x6x128xf32, #tpu.memory_space<vmem>>, vector<1x2x6x128xf32>
    %78 = vector.shape_cast %77 : vector<1x2x6x128xf32> to vector<2x6x128xf32>
    %79 = vector.broadcast %54 : vector<2x1x128xf32> to vector<2x6x128xf32>
    %80 = vector.broadcast %63 : vector<1x6x128xf32> to vector<2x6x128xf32>
    %81 = arith.mulf %79, %80 : vector<2x6x128xf32>
    %82 = vector.broadcast %57 : vector<2x1x128xf32> to vector<2x6x128xf32>
    %83 = vector.broadcast %60 : vector<1x6x128xf32> to vector<2x6x128xf32>
    %84 = arith.mulf %82, %83 : vector<2x6x128xf32>
    %85 = arith.addf %81, %84 : vector<2x6x128xf32>
    %86 = arith.addf %78, %85 : vector<2x6x128xf32>
    %c1_42 = arith.constant 1 : index
    %c0_43 = arith.constant 0 : index
    %c0_44 = arith.constant 0 : index
    %c0_45 = arith.constant 0 : index
    %87 = vector.load %arg3[%c1_42, %c0_43, %c0_44, %c0_45] : memref<2x2x6x128xf32, #tpu.memory_space<vmem>>, vector<1x2x6x128xf32>
    %88 = vector.shape_cast %87 : vector<1x2x6x128xf32> to vector<2x6x128xf32>
    %89 = vector.shape_cast %86 : vector<2x6x128xf32> to vector<1x2x6x128xf32>
    tpu.vector_store %arg3[%c1_42, %c0_43, %c0_44, %c0_45], %89 {strides = array<i32>} : memref<2x2x6x128xf32, #tpu.memory_space<vmem>>, vector<1x2x6x128xf32>,
    %c2_i32 = arith.constant 2 : i32
    %90 = arith.index_cast %c2_i32 : i32 to index
    %c0_46 = arith.constant 0 : index
    %c0_47 = arith.constant 0 : index
    %c0_48 = arith.constant 0 : index
    %91 = vector.load %arg1[%90, %c0_46, %c0_47, %c0_48] : memref<4x2x2x128xf32, #tpu.memory_space<vmem>>, vector<1x2x2x128xf32>
    %92 = vector.shape_cast %91 : vector<1x2x2x128xf32> to vector<2x2x128xf32>
    %93 = arith.index_cast %c2_i32 : i32 to index
    %c0_49 = arith.constant 0 : index
    %c0_50 = arith.constant 0 : index
    %c0_51 = arith.constant 0 : index
    %94 = vector.load %arg2[%93, %c0_49, %c0_50, %c0_51] : memref<4x2x6x128xf32, #tpu.memory_space<vmem>>, vector<1x2x6x128xf32>
    %95 = vector.shape_cast %94 : vector<1x2x6x128xf32> to vector<2x6x128xf32>
    %96 = vector.extract_strided_slice %92 {offsets = [0, 0, 0], sizes = [1, 2, 128], strides = [1, 1, 1]} : vector<2x2x128xf32> to vector<1x2x128xf32>
    %97 = vector.shape_cast %96 : vector<1x2x128xf32> to vector<2x128xf32>
    %98 = vector.shape_cast %97 : vector<2x128xf32> to vector<2x1x128xf32>
    %99 = vector.extract_strided_slice %92 {offsets = [1, 0, 0], sizes = [1, 2, 128], strides = [1, 1, 1]} : vector<2x2x128xf32> to vector<1x2x128xf32>
    %100 = vector.shape_cast %99 : vector<1x2x128xf32> to vector<2x128xf32>
    %101 = vector.shape_cast %100 : vector<2x128xf32> to vector<2x1x128xf32>
    %102 = vector.extract_strided_slice %95 {offsets = [0, 0, 0], sizes = [1, 6, 128], strides = [1, 1, 1]} : vector<2x6x128xf32> to vector<1x6x128xf32>
    %103 = vector.shape_cast %102 : vector<1x6x128xf32> to vector<6x128xf32>
    %104 = vector.shape_cast %103 : vector<6x128xf32> to vector<1x6x128xf32>
    %105 = vector.extract_strided_slice %95 {offsets = [1, 0, 0], sizes = [1, 6, 128], strides = [1, 1, 1]} : vector<2x6x128xf32> to vector<1x6x128xf32>
    %106 = vector.shape_cast %105 : vector<1x6x128xf32> to vector<6x128xf32>
    %107 = vector.shape_cast %106 : vector<6x128xf32> to vector<1x6x128xf32>
    %c0_52 = arith.constant 0 : index
    %c0_53 = arith.constant 0 : index
    %c0_54 = arith.constant 0 : index
    %c0_55 = arith.constant 0 : index
    %108 = vector.load %arg3[%c0_52, %c0_53, %c0_54, %c0_55] : memref<2x2x6x128xf32, #tpu.memory_space<vmem>>, vector<1x2x6x128xf32>
    %109 = vector.shape_cast %108 : vector<1x2x6x128xf32> to vector<2x6x128xf32>
    %110 = vector.broadcast %98 : vector<2x1x128xf32> to vector<2x6x128xf32>
    %111 = vector.broadcast %104 : vector<1x6x128xf32> to vector<2x6x128xf32>
    %112 = arith.mulf %110, %111 : vector<2x6x128xf32>
    %113 = vector.broadcast %101 : vector<2x1x128xf32> to vector<2x6x128xf32>
    %114 = vector.broadcast %107 : vector<1x6x128xf32> to vector<2x6x128xf32>
    %115 = arith.mulf %113, %114 : vector<2x6x128xf32>
    %116 = arith.subf %112, %115 : vector<2x6x128xf32>
    %117 = arith.addf %109, %116 : vector<2x6x128xf32>
    %c0_56 = arith.constant 0 : index
    %c0_57 = arith.constant 0 : index
    %c0_58 = arith.constant 0 : index
    %c0_59 = arith.constant 0 : index
    %118 = vector.load %arg3[%c0_56, %c0_57, %c0_58, %c0_59] : memref<2x2x6x128xf32, #tpu.memory_space<vmem>>, vector<1x2x6x128xf32>
    %119 = vector.shape_cast %118 : vector<1x2x6x128xf32> to vector<2x6x128xf32>
    %120 = vector.shape_cast %117 : vector<2x6x128xf32> to vector<1x2x6x128xf32>
    tpu.vector_store %arg3[%c0_56, %c0_57, %c0_58, %c0_59], %120 {strides = array<i32>} : memref<2x2x6x128xf32, #tpu.memory_space<vmem>>, vector<1x2x6x128xf32>,
    %c1_60 = arith.constant 1 : index
    %c0_61 = arith.constant 0 : index
    %c0_62 = arith.constant 0 : index
    %c0_63 = arith.constant 0 : index
    %121 = vector.load %arg3[%c1_60, %c0_61, %c0_62, %c0_63] : memref<2x2x6x128xf32, #tpu.memory_space<vmem>>, vector<1x2x6x128xf32>
    %122 = vector.shape_cast %121 : vector<1x2x6x128xf32> to vector<2x6x128xf32>
    %123 = vector.broadcast %98 : vector<2x1x128xf32> to vector<2x6x128xf32>
    %124 = vector.broadcast %107 : vector<1x6x128xf32> to vector<2x6x128xf32>
    %125 = arith.mulf %123, %124 : vector<2x6x128xf32>
    %126 = vector.broadcast %101 : vector<2x1x128xf32> to vector<2x6x128xf32>
    %127 = vector.broadcast %104 : vector<1x6x128xf32> to vector<2x6x128xf32>
    %128 = arith.mulf %126, %127 : vector<2x6x128xf32>
    %129 = arith.addf %125, %128 : vector<2x6x128xf32>
    %130 = arith.addf %122, %129 : vector<2x6x128xf32>
    %c1_64 = arith.constant 1 : index
    %c0_65 = arith.constant 0 : index
    %c0_66 = arith.constant 0 : index
    %c0_67 = arith.constant 0 : index
    %131 = vector.load %arg3[%c1_64, %c0_65, %c0_66, %c0_67] : memref<2x2x6x128xf32, #tpu.memory_space<vmem>>, vector<1x2x6x128xf32>
    %132 = vector.shape_cast %131 : vector<1x2x6x128xf32> to vector<2x6x128xf32>
    %133 = vector.shape_cast %130 : vector<2x6x128xf32> to vector<1x2x6x128xf32>
    tpu.vector_store %arg3[%c1_64, %c0_65, %c0_66, %c0_67], %133 {strides = array<i32>} : memref<2x2x6x128xf32, #tpu.memory_space<vmem>>, vector<1x2x6x128xf32>,
    %c3_i32 = arith.constant 3 : i32
    %134 = arith.index_cast %c3_i32 : i32 to index
    %c0_68 = arith.constant 0 : index
    %c0_69 = arith.constant 0 : index
    %c0_70 = arith.constant 0 : index
    %135 = vector.load %arg1[%134, %c0_68, %c0_69, %c0_70] : memref<4x2x2x128xf32, #tpu.memory_space<vmem>>, vector<1x2x2x128xf32>
    %136 = vector.shape_cast %135 : vector<1x2x2x128xf32> to vector<2x2x128xf32>
    %137 = arith.index_cast %c3_i32 : i32 to index
    %c0_71 = arith.constant 0 : index
    %c0_72 = arith.constant 0 : index
    %c0_73 = arith.constant 0 : index
    %138 = vector.load %arg2[%137, %c0_71, %c0_72, %c0_73] : memref<4x2x6x128xf32, #tpu.memory_space<vmem>>, vector<1x2x6x128xf32>
    %139 = vector.shape_cast %138 : vector<1x2x6x128xf32> to vector<2x6x128xf32>
    %140 = vector.extract_strided_slice %136 {offsets = [0, 0, 0], sizes = [1, 2, 128], strides = [1, 1, 1]} : vector<2x2x128xf32> to vector<1x2x128xf32>
    %141 = vector.shape_cast %140 : vector<1x2x128xf32> to vector<2x128xf32>
    %142 = vector.shape_cast %141 : vector<2x128xf32> to vector<2x1x128xf32>
    %143 = vector.extract_strided_slice %136 {offsets = [1, 0, 0], sizes = [1, 2, 128], strides = [1, 1, 1]} : vector<2x2x128xf32> to vector<1x2x128xf32>
    %144 = vector.shape_cast %143 : vector<1x2x128xf32> to vector<2x128xf32>
    %145 = vector.shape_cast %144 : vector<2x128xf32> to vector<2x1x128xf32>
    %146 = vector.extract_strided_slice %139 {offsets = [0, 0, 0], sizes = [1, 6, 128], strides = [1, 1, 1]} : vector<2x6x128xf32> to vector<1x6x128xf32>
    %147 = vector.shape_cast %146 : vector<1x6x128xf32> to vector<6x128xf32>
    %148 = vector.shape_cast %147 : vector<6x128xf32> to vector<1x6x128xf32>
    %149 = vector.extract_strided_slice %139 {offsets = [1, 0, 0], sizes = [1, 6, 128], strides = [1, 1, 1]} : vector<2x6x128xf32> to vector<1x6x128xf32>
    %150 = vector.shape_cast %149 : vector<1x6x128xf32> to vector<6x128xf32>
    %151 = vector.shape_cast %150 : vector<6x128xf32> to vector<1x6x128xf32>
    %c0_74 = arith.constant 0 : index
    %c0_75 = arith.constant 0 : index
    %c0_76 = arith.constant 0 : index
    %c0_77 = arith.constant 0 : index
    %152 = vector.load %arg3[%c0_74, %c0_75, %c0_76, %c0_77] : memref<2x2x6x128xf32, #tpu.memory_space<vmem>>, vector<1x2x6x128xf32>
    %153 = vector.shape_cast %152 : vector<1x2x6x128xf32> to vector<2x6x128xf32>
    %154 = vector.broadcast %142 : vector<2x1x128xf32> to vector<2x6x128xf32>
    %155 = vector.broadcast %148 : vector<1x6x128xf32> to vector<2x6x128xf32>
    %156 = arith.mulf %154, %155 : vector<2x6x128xf32>
    %157 = vector.broadcast %145 : vector<2x1x128xf32> to vector<2x6x128xf32>
    %158 = vector.broadcast %151 : vector<1x6x128xf32> to vector<2x6x128xf32>
    %159 = arith.mulf %157, %158 : vector<2x6x128xf32>
    %160 = arith.subf %156, %159 : vector<2x6x128xf32>
    %161 = arith.addf %153, %160 : vector<2x6x128xf32>
    %c0_78 = arith.constant 0 : index
    %c0_79 = arith.constant 0 : index
    %c0_80 = arith.constant 0 : index
    %c0_81 = arith.constant 0 : index
    %162 = vector.load %arg3[%c0_78, %c0_79, %c0_80, %c0_81] : memref<2x2x6x128xf32, #tpu.memory_space<vmem>>, vector<1x2x6x128xf32>
    %163 = vector.shape_cast %162 : vector<1x2x6x128xf32> to vector<2x6x128xf32>
    %164 = vector.shape_cast %161 : vector<2x6x128xf32> to vector<1x2x6x128xf32>
    tpu.vector_store %arg3[%c0_78, %c0_79, %c0_80, %c0_81], %164 {strides = array<i32>} : memref<2x2x6x128xf32, #tpu.memory_space<vmem>>, vector<1x2x6x128xf32>,
    %c1_82 = arith.constant 1 : index
    %c0_83 = arith.constant 0 : index
    %c0_84 = arith.constant 0 : index
    %c0_85 = arith.constant 0 : index
    %165 = vector.load %arg3[%c1_82, %c0_83, %c0_84, %c0_85] : memref<2x2x6x128xf32, #tpu.memory_space<vmem>>, vector<1x2x6x128xf32>
    %166 = vector.shape_cast %165 : vector<1x2x6x128xf32> to vector<2x6x128xf32>
    %167 = vector.broadcast %142 : vector<2x1x128xf32> to vector<2x6x128xf32>
    %168 = vector.broadcast %151 : vector<1x6x128xf32> to vector<2x6x128xf32>
    %169 = arith.mulf %167, %168 : vector<2x6x128xf32>
    %170 = vector.broadcast %145 : vector<2x1x128xf32> to vector<2x6x128xf32>
    %171 = vector.broadcast %148 : vector<1x6x128xf32> to vector<2x6x128xf32>
    %172 = arith.mulf %170, %171 : vector<2x6x128xf32>
    %173 = arith.addf %169, %172 : vector<2x6x128xf32>
    %174 = arith.addf %166, %173 : vector<2x6x128xf32>
    %c1_86 = arith.constant 1 : index
    %c0_87 = arith.constant 0 : index
    %c0_88 = arith.constant 0 : index
    %c0_89 = arith.constant 0 : index
    %175 = vector.load %arg3[%c1_86, %c0_87, %c0_88, %c0_89] : memref<2x2x6x128xf32, #tpu.memory_space<vmem>>, vector<1x2x6x128xf32>
    %176 = vector.shape_cast %175 : vector<1x2x6x128xf32> to vector<2x6x128xf32>
    %177 = vector.shape_cast %174 : vector<2x6x128xf32> to vector<1x2x6x128xf32>
    tpu.vector_store %arg3[%c1_86, %c0_87, %c0_88, %c0_89], %177 {strides = array<i32>} : memref<2x2x6x128xf32, #tpu.memory_space<vmem>>, vector<1x2x6x128xf32>,
    %c4_i32 = arith.constant 4 : i32
    return
  }
  func.func @transform_0(%arg0: i32) -> (i32, i32, i32, i32) {
    %c0_i32 = arith.constant 0 : i32
    %c0_i32_0 = arith.constant 0 : i32
    %c0_i32_1 = arith.constant 0 : i32
    %c0_i32_2 = arith.constant 0 : i32
    return %c0_i32, %c0_i32_0, %c0_i32_1, %arg0 : i32, i32, i32, i32
  }
  func.func @transform_1(%arg0: i32) -> (i32, i32, i32, i32) {
    %c0_i32 = arith.constant 0 : i32
    %c0_i32_0 = arith.constant 0 : i32
    %c0_i32_1 = arith.constant 0 : i32
    %c0_i32_2 = arith.constant 0 : i32
    return %c0_i32, %c0_i32_0, %c0_i32_1, %arg0 : i32, i32, i32, i32
  }
  func.func @transform_2(%arg0: i32) -> (i32, i32, i32, i32) {
    %c0_i32 = arith.constant 0 : i32
    %c0_i32_0 = arith.constant 0 : i32
    %c0_i32_1 = arith.constant 0 : i32
    %c0_i32_2 = arith.constant 0 : i32
    return %c0_i32, %c0_i32_0, %c0_i32_1, %arg0 : i32, i32, i32, i32
  }
}

</mosaic_0001>

<bundles_post_ra>
// kernel: tpu_custom_call.1
= control target key start
LH: loop header
LB: loop body
LE: loop exit
PB: predicated region body
PF: predicated region fallthrough
CT: control target
= control target key end

     0   :  { %v31_v0 = vlaneseq  ;;  %v440_v1 = vmov 0.0   ;;  %v441_v3 = vmov 1966171168   ;;  %s649_s2 = inlined_call_operand.vmem [shape: f32[2,2,6,128], index: 2, kind: output, shape index: {}]   ;;  %s650_s0 = inlined_call_operand.vmem [shape: f32[4,2,2,128], index: 0, kind: input, shape index: {}]   ;;  %s651_s1 = inlined_call_operand.vmem [shape: f32[4,2,6,128], index: 1, kind: input, shape index: {}]  }
   0x1   :  { %11 = vst [vmem:[%s649_s2] sm:$0x3f] %v440_v1  ;;  %12 = vst [vmem:[%s649_s2 + $0x8] sm:$0x3f] %v440_v1  ;;  %v29_v4 = vunpack.c.l.s4 %v441_v3  ;;  %v17_v20 = vld [vmem:[%s651_s1] sm:$0x3f] }
   0x2   :  { %13 = vst [vmem:[%s649_s2 + $0x10] sm:$0x3f] %v440_v1  ;;  %14 = vst [vmem:[%s649_s2 + $0x18] sm:$0x3f] %v440_v1  ;;  %v32_v7 = vshrl.u32 %v31_v0, 7 }
   0x3   :  { %v402_v2 = vld.sshfl [vmem:[%s650_s0] sm:$0x11 pattern:$0x75316420]  ;;  %v30_v6 = vunpack.c.0.s8 %v29_v4  ;;  %v18_v21 = vld [vmem:[%s651_s1 + $0x8] sm:$0x3f] }
   0x4   :  { %v403_v5 = vld.sshfl [vmem:[%s650_s0 + $0x2] sm:$0x11 pattern:$0x75316420]  ;;  %v27_v8 = vcombine.high %v402_v2, %v402_v2  ;;  %v483_v14 = vsub.s32 0, %v32_v7 }
   0x5   :  { %v50_v9 = vcombine.high %v403_v5, %v403_v5  ;;  %v412_v10 = vld.sshfl [vmem:[%s650_s0 + $0x4] sm:$0x11 pattern:$0x75316420]  ;;  %v481_v13 = vsub.s32 %v30_v6, %v32_v7  ;;  %v410_v42 = vld [vmem:[%s651_s1 + $0x10] sm:$0x3f] }
   0x6   :  { %v413_v11 = vld.sshfl [vmem:[%s650_s0 + $0x6] sm:$0x11 pattern:$0x75316420]  ;;  %v124_v12 = vcombine.high %v412_v10, %v412_v10  ;;  %v411_v47 = vld [vmem:[%s651_s1 + $0x18] sm:$0x3f] }
   0x7   :  { %v147_v15 = vcombine.high %v413_v11, %v413_v11  ;;  %v34_v16 = vrot.slane %v402_v2, %v481_v13  ;;  %v57_v17 = vrot.slane %v403_v5, %v481_v13  ;;  %v41_v18 = vrot.slane %v27_v8, %v481_v13  ;;  %v422_v52 = vld.sshfl [vmem:[%s650_s0 + $0x8] sm:$0x11 pattern:$0x75316420] }
   0x8   :  { %v64_v19 = vrot.slane %v50_v9, %v481_v13  ;;  %v131_v22 = vrot.slane %v412_v10, %v481_v13  ;;  %v154_v23 = vrot.slane %v413_v11, %v481_v13  ;;  %v138_v24 = vrot.slane %v124_v12, %v481_v13  ;;  %v65_v36 = vld [vmem:[%s649_s2] sm:$0x3f]  ;;  %v66_v37 = vld [vmem:[%s649_s2 + $0x8] sm:$0x3f] }
   0x9   :  { %v161_v25 = vrot.slane %v147_v15, %v481_v13  ;;  %v70_v26 = vrot.slane %v34_v16, %v483_v14  ;;  %v82_v27 = vrot.slane %v57_v17, %v483_v14  ;;  %v74_v28 = vrot.slane %v41_v18, %v483_v14  ;;  %v404_v45 = vld [vmem:[%s649_s2 + $0x10] sm:$0x3f]  ;;  %v405_v46 = vld [vmem:[%s649_s2 + $0x18] sm:$0x3f]  ;;  %v420_v16 = vld [vmem:[%s651_s1 + $0x20] sm:$0x3f] }
   0xa   :  { %v86_v29 = vrot.slane %v64_v19, %v483_v14  ;;  %v167_v30 = vrot.slane %v131_v22, %v483_v14  ;;  %v179_v31 = vrot.slane %v154_v23, %v483_v14  ;;  %v171_v48 = vrot.slane %v138_v24, %v483_v14  ;;  %v423_v55 = vld.sshfl [vmem:[%s650_s0 + $0xa] sm:$0x11 pattern:$0x75316420] }
   0xb   :  { %v77_v32 = vmul.f32 %v70_v26, %v17_v20  ;;  %v89_v33 = vmul.f32 %v82_v27, %v18_v21  ;;  %v78_v34 = vmul.f32 %v74_v28, %v17_v20  ;;  %v100_v38 = vmul.f32 %v70_v26, %v18_v21  ;;  %v432_v10 = vld.sshfl [vmem:[%s650_s0 + $0xc] sm:$0x11 pattern:$0x75316420] }
   0xc   :  { %v90_v35 = vmul.f32 %v86_v29, %v18_v21  ;;  %v102_v39 = vmul.f32 %v82_v27, %v17_v20  ;;  %v101_v40 = vmul.f32 %v74_v28, %v18_v21  ;;  %v103_v41 = vmul.f32 %v86_v29, %v17_v20  ;;  %v433_v15 = vld.sshfl [vmem:[%s650_s0 + $0xe] sm:$0x11 pattern:$0x75316420]  ;;  %v421_v23 = vld [vmem:[%s651_s1 + $0x28] sm:$0x3f] }
   0xd   :  { %v91_v43 = vsub.f32 %v77_v32, %v89_v33  ;;  %v183_v49 = vrot.slane %v161_v25, %v483_v14  ;;  %v174_v58 = vmul.f32 %v410_v42, %v167_v30  ;;  %v186_v59 = vmul.f32 %v411_v47, %v179_v31 }
   0xe   :  { %v92_v44 = vsub.f32 %v78_v34, %v90_v35  ;;  %v104_v50 = vadd.f32 %v102_v39, %v100_v38  ;;  %v105_v51 = vadd.f32 %v103_v41, %v101_v40  ;;  %v175_v60 = vmul.f32 %v410_v42, %v171_v48 }
   0xf   :  { %v93_v53 = vadd.f32 %v91_v43, %v65_v36  ;;  %v187_v61 = vmul.f32 %v411_v47, %v183_v49  ;;  %v196_v62 = vmul.f32 %v411_v47, %v167_v30  ;;  %v198_v63 = vmul.f32 %v410_v42, %v179_v31 }
  0x10   :  { %v94_v54 = vadd.f32 %v92_v44, %v66_v37  ;;  %v106_v56 = vadd.f32 %v404_v45, %v104_v50  ;;  %v107_v57 = vadd.f32 %v405_v46, %v105_v51  ;;  %v197_v0 = vmul.f32 %v411_v47, %v171_v48  ;;  %v430_v48 = vld [vmem:[%s651_s1 + $0x30] sm:$0x3f] }
  0x11   :  { %95 = vst [vmem:[%s649_s2] sm:$0x3f] %v93_v53  ;;  %v199_v1 = vmul.f32 %v410_v42, %v183_v49  ;;  %v220_v2 = vcombine.high %v422_v52, %v422_v52  ;;  %v243_v3 = vcombine.high %v423_v55, %v423_v55  ;;  %v227_v4 = vrot.slane %v422_v52, %v481_v13 }
  0x12   :  { %96 = vst [vmem:[%s649_s2 + $0x8] sm:$0x3f] %v94_v54  ;;  %406 = vst [vmem:[%s649_s2 + $0x10] sm:$0x3f] %v106_v56  ;;  %v250_v5 = vrot.slane %v423_v55, %v481_v13  ;;  %v188_v8 = vsub.f32 %v174_v58, %v186_v59  ;;  %v189_v9 = vsub.f32 %v175_v60, %v187_v61  ;;  %v431_v54 = vld [vmem:[%s651_s1 + $0x38] sm:$0x3f] }
  0x13   :  { %407 = vst [vmem:[%s649_s2 + $0x18] sm:$0x3f] %v107_v57  ;;  %v234_v6 = vrot.slane %v220_v2, %v481_v13  ;;  %v257_v7 = vrot.slane %v243_v3, %v481_v13  ;;  %v200_v11 = vadd.f32 %v198_v63, %v196_v62  ;;  %v201_v12 = vadd.f32 %v199_v1, %v197_v0 }
  0x14   :  { %v263_v17 = vrot.slane %v227_v4, %v483_v14  ;;  %v275_v18 = vrot.slane %v250_v5, %v483_v14  ;;  %v316_v28 = vcombine.high %v432_v10, %v432_v10  ;;  %v339_v29 = vcombine.high %v433_v15, %v433_v15 }
  0x15   :  { %v267_v19 = vrot.slane %v234_v6, %v483_v14  ;;  %v279_v20 = vrot.slane %v257_v7, %v483_v14  ;;  %v323_v40 = vrot.slane %v432_v10, %v481_v13  ;;  %v346_v41 = vrot.slane %v433_v15, %v481_v13 }
  0x16   :  { %v270_v32 = vmul.f32 %v420_v16, %v263_v17  ;;  %v282_v33 = vmul.f32 %v421_v23, %v275_v18  ;;  %v292_v36 = vmul.f32 %v421_v23, %v263_v17  ;;  %v294_v37 = vmul.f32 %v420_v16, %v275_v18 }
  0x17   :  { %v271_v34 = vmul.f32 %v420_v16, %v267_v19  ;;  %v283_v35 = vmul.f32 %v421_v23, %v279_v20  ;;  %v293_v38 = vmul.f32 %v421_v23, %v267_v19  ;;  %v295_v39 = vmul.f32 %v420_v16, %v279_v20 }
  0x18   :  { %v162_v21 = vld [vmem:[%s649_s2] sm:$0x3f]  ;;  %v330_v42 = vrot.slane %v316_v28, %v481_v13  ;;  %v353_v43 = vrot.slane %v339_v29, %v481_v13  ;;  %v284_v44 = vsub.f32 %v270_v32, %v282_v33  ;;  %v296_v46 = vadd.f32 %v294_v37, %v292_v36 }
  0x19   :  { %v163_v22 = vld [vmem:[%s649_s2 + $0x8] sm:$0x3f]  ;;  %v190_v24 = vadd.f32 %v188_v8, %v162_v21  ;;  %v414_v26 = vld [vmem:[%s649_s2 + $0x10] sm:$0x3f]  ;;  %v285_v45 = vsub.f32 %v271_v34, %v283_v35  ;;  %v297_v47 = vadd.f32 %v295_v39, %v293_v38  ;;  %v359_v49 = vrot.slane %v323_v40, %v483_v14 }
  0x1a   :  { %v191_v25 = vadd.f32 %v189_v9, %v163_v22  ;;  %v415_v27 = vld [vmem:[%s649_s2 + $0x18] sm:$0x3f]  ;;  %v202_v30 = vadd.f32 %v414_v26, %v200_v11  ;;  %v371_v50 = vrot.slane %v346_v41, %v483_v14  ;;  %v363_v51 = vrot.slane %v330_v42, %v483_v14 }
  0x1b   :  { %v203_v31 = vadd.f32 %v415_v27, %v201_v12  ;;  %192 = vst [vmem:[%s649_s2] sm:$0x3f] %v190_v24  ;;  %v375_v52 = vrot.slane %v353_v43, %v483_v14  ;;  %v366_v60 = vmul.f32 %v430_v48, %v359_v49  ;;  %v388_v0 = vmul.f32 %v431_v54, %v359_v49 }
  0x1c   :  { %193 = vst [vmem:[%s649_s2 + $0x8] sm:$0x3f] %v191_v25  ;;  %416 = vst [vmem:[%s649_s2 + $0x10] sm:$0x3f] %v202_v30  ;;  %v378_v61 = vmul.f32 %v431_v54, %v371_v50  ;;  %v367_v62 = vmul.f32 %v430_v48, %v363_v51  ;;  %v390_v1 = vmul.f32 %v430_v48, %v371_v50 }
  0x1d   :  { %417 = vst [vmem:[%s649_s2 + $0x18] sm:$0x3f] %v203_v31  ;;  %v379_v63 = vmul.f32 %v431_v54, %v375_v52  ;;  %v389_v2 = vmul.f32 %v431_v54, %v363_v51  ;;  %v391_v3 = vmul.f32 %v430_v48, %v375_v52 }
  0x1e   :  { %v380_v4 = vsub.f32 %v366_v60, %v378_v61  ;;  %v392_v6 = vadd.f32 %v390_v1, %v388_v0 }
  0x1f   :  { %v381_v5 = vsub.f32 %v367_v62, %v379_v63  ;;  %v393_v7 = vadd.f32 %v391_v3, %v389_v2 }
  0x22   :  { %v258_v13 = vld [vmem:[%s649_s2] sm:$0x3f] }
  0x23   :  { %v259_v53 = vld [vmem:[%s649_s2 + $0x8] sm:$0x3f]  ;;  %v286_v55 = vadd.f32 %v284_v44, %v258_v13  ;;  %v424_v57 = vld [vmem:[%s649_s2 + $0x10] sm:$0x3f] }
  0x24   :  { %v287_v56 = vadd.f32 %v285_v45, %v259_v53  ;;  %v425_v14 = vld [vmem:[%s649_s2 + $0x18] sm:$0x3f]  ;;  %v298_v58 = vadd.f32 %v424_v57, %v296_v46 }
  0x25   :  { %v299_v59 = vadd.f32 %v425_v14, %v297_v47  ;;  %288 = vst [vmem:[%s649_s2] sm:$0x3f] %v286_v55 }
  0x26   :  { %289 = vst [vmem:[%s649_s2 + $0x8] sm:$0x3f] %v287_v56  ;;  %426 = vst [vmem:[%s649_s2 + $0x10] sm:$0x3f] %v298_v58 }
  0x27   :  { %427 = vst [vmem:[%s649_s2 + $0x18] sm:$0x3f] %v299_v59 }
  0x2c   :  { %v354_v8 = vld [vmem:[%s649_s2] sm:$0x3f] }
  0x2d   :  { %v355_v9 = vld [vmem:[%s649_s2 + $0x8] sm:$0x3f]  ;;  %v382_v10 = vadd.f32 %v380_v4, %v354_v8  ;;  %v434_v12 = vld [vmem:[%s649_s2 + $0x10] sm:$0x3f] }
  0x2e   :  { %v383_v11 = vadd.f32 %v381_v5, %v355_v9  ;;  %v435_v15 = vld [vmem:[%s649_s2 + $0x18] sm:$0x3f]  ;;  %v394_v16 = vadd.f32 %v434_v12, %v392_v6 }
  0x2f   :  { %v395_v17 = vadd.f32 %v435_v15, %v393_v7  ;;  %384 = vst [vmem:[%s649_s2] sm:$0x3f] %v382_v10 }
  0x30   :  { %385 = vst [vmem:[%s649_s2 + $0x8] sm:$0x3f] %v383_v11  ;;  %436 = vst [vmem:[%s649_s2 + $0x10] sm:$0x3f] %v394_v16 }
  0x31   :  { %437 = vst [vmem:[%s649_s2 + $0x18] sm:$0x3f] %v395_v17 }

</bundles_post_ra>
